<compile_context>
chip_gen: v6e
topology: v6e:2x2x1
jax: 0.10.0
libtpu: 0.0.40
codegen_flags: <defaults>
</compile_context>

<pallas_src>
import jax
import jax.numpy as jnp
from jax.experimental import pallas as pl
from jax.experimental.pallas import tpu as pltpu


def _round_up(x, m):
    return ((x + m - 1) // m) * m


def _vmem_budget_bytes():
    """~75% of the chip's physical VMEM (64 MiB on v7x, 128 MiB on v5e/v6e)."""
    cap = 64 << 20  # conservative default = smallest generation (v7x)
    try:
        info = pltpu.get_tpu_info()
        cap = int(getattr(info, "vmem_capacity_bytes", cap))
    except Exception:
        pass
    return int(0.75 * cap)


def _vmem_limit(block_bytes, budget):
    # in + out, double-buffered (~4 live blocks) plus headroom; clamp to budget.
    return int(min(max(6 * block_bytes + (4 << 20), 16 << 20), budget))


def _pixelnorm_kernel(x_ref, o_ref):
    # Block view: (C, T) or (N, C, T). Channels sit on the sublane axis
    # (second-to-last), pixels on the lane axis (last), so the channel
    # reduction is a cheap sublane reduce.
    x = x_ref[...]
    xf = x.astype(jnp.float32)
    ms = jnp.mean(xf * xf, axis=-2, keepdims=True)   # mean over channels
    inv = jax.lax.rsqrt(ms + 1e-8)                   # single EUP op (vs sqrt+div)
    if x.dtype == jnp.bfloat16:
        # stats stay in f32; the broadcast multiply / store stay bf16
        o_ref[...] = x * inv.astype(jnp.bfloat16)
    else:
        o_ref[...] = (xf * inv).astype(o_ref.dtype)


@jax.jit
def pixel_norm(x):
    """x: (N, C, H, W) -> (N, C, H, W), normalized over C per spatial location."""
    N, C, H, W = x.shape
    HW = H * W
    itemsize = jnp.dtype(x.dtype).itemsize
    x3 = x.reshape(N, C, HW)

    budget = _vmem_budget_bytes()
    # Target ~1-4 MiB per block (near HBM roofline), leaving room for
    # double-buffering under the per-generation VMEM budget.
    target = int(min(4 << 20, max((budget - (4 << 20)) // 6, 1 << 20)))

    total_bytes = N * C * HW * itemsize
    per_image_bytes = C * HW * itemsize

    cost = pl.CostEstimate(
        flops=3 * N * C * HW,          # square + reduce + scale
        transcendentals=N * HW,        # one rsqrt per pixel
        bytes_accessed=2 * total_bytes,
    )

    def call(grid, spec, block_bytes, dim_sem, operand, out_hw):
        return pl.pallas_call(
            _pixelnorm_kernel,
            out_shape=jax.ShapeDtypeStruct((N, C, out_hw), x.dtype),
            grid_spec=pltpu.PrefetchScalarGridSpec(
                num_scalar_prefetch=0,
                grid=grid,
                in_specs=[spec],
                out_specs=spec,
            ),
            compiler_params=pltpu.CompilerParams(
                dimension_semantics=dim_sem,
                vmem_limit_bytes=_vmem_limit(block_bytes, budget),
            ),
            cost_estimate=cost,
        )(operand)

    # ------------------------------------------------------------------ tiny:
    # whole tensor fits in one block -> fold batch into the block, single grid
    # step, one DMA in / one DMA out (amortizes the pallas_call fixed cost).
    if total_bytes <= target:
        spec = pl.BlockSpec((N, C, HW), lambda i: (0, 0, 0))
        out3 = call((1,), spec, total_bytes, ("arbitrary",), x3, HW)
        return out3.reshape(N, C, H, W)

    # -------------------------------------------------- per-image full block:
    # one (C, HW) block per batch element; full-extent last dim bypasses the
    # 128-lane divisibility rule, so ragged / small HW needs no padding.
    if per_image_bytes <= target or HW < 128:
        spec = pl.BlockSpec((None, C, HW), lambda n: (n, 0, 0))
        out3 = call((N,), spec, per_image_bytes, ("parallel",), x3, HW)
        return out3.reshape(N, C, H, W)

    # --------------------------------------------------------- tiled spatial:
    # lane-dense tile T (multiple of 128) sized so C*T*itemsize ~= target.
    t_budget = max(128, min(HW, (target // (C * itemsize)) // 128 * 128))
    if N == 1 and HW >= 256:
        # keep >= 2 parallel programs so both v7x TensorCores are fed
        t_budget = min(t_budget, max(128, (HW // 2) // 128 * 128))

    T = 0
    t = t_budget
    while t >= 128:
        if HW % t == 0:
            T = t
            break
        t -= 128

    if T > 0:
        # exact tiling -> no padding, no trailing slice
        spec = pl.BlockSpec((None, C, T), lambda n, s: (n, 0, s))
        out3 = call((N, HW // T), spec, C * T * itemsize,
                    ("parallel", "parallel"), x3, HW)
        return out3.reshape(N, C, H, W)

    # ------------------------------------------------- rare ragged fallback:
    # HW is large AND not a multiple of 128 (never hits StyleGAN pow-2 sizes).
    T = t_budget
    HW_pad = _round_up(HW, T)
    x3p = jnp.pad(x3, ((0, 0), (0, 0), (0, HW_pad - HW)))
    spec = pl.BlockSpec((None, C, T), lambda n, s: (n, 0, s))
    out3 = call((N, HW_pad // T), spec, C * T * itemsize,
                ("parallel", "parallel"), x3p, HW_pad)
    return out3[:, :, :HW].reshape(N, C, H, W)


def _ref(x):
    return x / jnp.sqrt(jnp.mean(x * x, axis=1, keepdims=True) + 1e-8)


if __name__ == "__main__":
    key = jax.random.PRNGKey(0)

    # 1) tiny path (batch folded into a single block)
    x = jax.random.normal(key, (2, 4, 16, 16), dtype=jnp.float32)
    out = pixel_norm(x)
    jax.block_until_ready(out)
    assert out.shape == x.shape
    assert jnp.allclose(out, _ref(x), atol=1e-5, rtol=1e-5)

    # 2) per-image full-extent block path (grid over batch, no padding)
    k2 = jax.random.PRNGKey(1)
    x2 = jax.random.normal(k2, (4, 128, 64, 64), dtype=jnp.float32)
    out2 = pixel_norm(x2)
    jax.block_until_ready(out2)
    assert jnp.allclose(out2, _ref(x2), atol=1e-5, rtol=1e-5)

    # 3) tiled-spatial path (exact 128-multiple tile dividing HW, no padding)
    k3 = jax.random.PRNGKey(2)
    x3 = jax.random.normal(k3, (2, 128, 128, 128), dtype=jnp.float32)
    out3 = pixel_norm(x3)
    jax.block_until_ready(out3)
    assert jnp.allclose(out3, _ref(x3), atol=1e-5, rtol=1e-5)

    print("KERNEL_OK")
</pallas_src>

<mosaic_0001>
module attributes {stable_mosaic.version = 11 : i64} {
  func.func @_pixelnorm_kernel(%arg0: i32, %arg1: memref<2x4x256xf32, #tpu.memory_space<vmem>>, %arg2: memref<2x4x256xf32, #tpu.memory_space<vmem>>) attributes {dimension_semantics = [#tpu.dimension_semantics<arbitrary>], iteration_bounds = array<i64: 1>, scalar_prefetch = 0 : i64, scratch_operands = 0 : i64, tpu.core_type = #tpu.core_type<tc>, window_params = [{pipeline_mode = #tpu.pipeline_mode<synchronous>, transform_indices = @transform_0, window_bounds = array<i64: 2, 4, 256>}, {pipeline_mode = #tpu.pipeline_mode<synchronous>, transform_indices = @transform_1, window_bounds = array<i64: 2, 4, 256>}]} {
    %c0 = arith.constant 0 : index
    %c0_0 = arith.constant 0 : index
    %c0_1 = arith.constant 0 : index
    %0 = vector.load %arg1[%c0, %c0_0, %c0_1] : memref<2x4x256xf32, #tpu.memory_space<vmem>>, vector<2x4x256xf32>
    %1 = arith.mulf %0, %0 : vector<2x4x256xf32>
    %cst = arith.constant dense<0.000000e+00> : vector<2x256xf32>
    %2 = vector.multi_reduction <add>, %1, %cst [1] : vector<2x4x256xf32> to vector<2x256xf32>
    %3 = vector.shape_cast %2 : vector<2x256xf32> to vector<2x1x256xf32>
    %cst_2 = arith.constant 4.000000e+00 : f32
    %4 = vector.broadcast %cst_2 : f32 to vector<2x1x256xf32>
    %5 = arith.divf %3, %4 : vector<2x1x256xf32>
    %cst_3 = arith.constant 9.99999993E-9 : f32
    %6 = vector.broadcast %cst_3 : f32 to vector<2x1x256xf32>
    %7 = arith.addf %5, %6 : vector<2x1x256xf32>
    %8 = math.rsqrt %7 : vector<2x1x256xf32>
    %9 = vector.broadcast %8 : vector<2x1x256xf32> to vector<2x4x256xf32>
    %10 = arith.mulf %0, %9 : vector<2x4x256xf32>
    %c0_4 = arith.constant 0 : index
    %c0_5 = arith.constant 0 : index
    %c0_6 = arith.constant 0 : index
    %11 = vector.load %arg2[%c0_4, %c0_5, %c0_6] : memref<2x4x256xf32, #tpu.memory_space<vmem>>, vector<2x4x256xf32>
    tpu.vector_store %arg2[%c0_4, %c0_5, %c0_6], %10 {strides = array<i32>} : memref<2x4x256xf32, #tpu.memory_space<vmem>>, vector<2x4x256xf32>,
    return
  }
  func.func @transform_0(%arg0: i32) -> (i32, i32, i32) {
    %c0_i32 = arith.constant 0 : i32
    %c0_i32_0 = arith.constant 0 : i32
    %c0_i32_1 = arith.constant 0 : i32
    %c0_i32_2 = arith.constant 0 : i32
    return %c0_i32, %c0_i32_0, %c0_i32_1 : i32, i32, i32
  }
  func.func @transform_1(%arg0: i32) -> (i32, i32, i32) {
    %c0_i32 = arith.constant 0 : i32
    %c0_i32_0 = arith.constant 0 : i32
    %c0_i32_1 = arith.constant 0 : i32
    %c0_i32_2 = arith.constant 0 : i32
    return %c0_i32, %c0_i32_0, %c0_i32_1 : i32, i32, i32
  }
}

</mosaic_0001>

<bundles_post_ra>
// kernel: pixel_norm.1
= control target key start
LH: loop header
LB: loop body
LE: loop exit
PB: predicated region body
PF: predicated region fallthrough
CT: control target
= control target key end

     0   :  { %vm18_vm0 = vcmask 1043456   ;;  %s106_s0 = inlined_call_operand.vmem [shape: f32[2,4,256], index: 0, kind: input, shape index: {}]   ;;  %s107_s1 = inlined_call_operand.vmem [shape: f32[2,4,256], index: 1, kind: output, shape index: {}]  }
   0x1   :  { %v8_v0 = vld [vmem:[%s106_s0] sm:$0xff]  ;;  %v9_v1 = vld [vmem:[%s106_s0 + $0x8] sm:$0xff] }
   0x2   :  { %v10_v2 = vmul.f32 %v8_v0, %v8_v0  ;;  %v11_v3 = vmul.f32 %v9_v1, %v9_v1 }
   0x4   :  { %v14_v4 = vcombine.high %v10_v2, %v10_v2  ;;  %v19_v5 = vsel %vm18_vm0, %v10_v2, 0.0  ;;  %v15_v6 = vcombine.high %v11_v3, %v11_v3  ;;  %v33_v7 = vsel %vm18_vm0, %v11_v3, 0.0 }
   0x5   :  { %v20_v8 = vrot.slane %v19_v5, 4  ;;  %v34_v9 = vrot.slane %v33_v7, 4 }
   0x6   :  { %v26_v10 = vsel %vm18_vm0, %v14_v4, 0.0  ;;  %v40_v11 = vsel %vm18_vm0, %v15_v6, 0.0 }
   0x7   :  { %v21_v12 = vadd.f32 %v20_v8, %v19_v5  ;;  %v27_v13 = vrot.slane %v26_v10, 4  ;;  %v35_v14 = vadd.f32 %v34_v9, %v33_v7  ;;  %v41_v15 = vrot.slane %v40_v11, 4 }
   0x9   :  { %v22_v16 = vrot.slane %v21_v12, 2  ;;  %v28_v17 = vadd.f32 %v27_v13, %v26_v10  ;;  %v36_v18 = vrot.slane %v35_v14, 2  ;;  %v42_v19 = vadd.f32 %v41_v15, %v40_v11 }
   0xb   :  { %v23_v20 = vadd.f32 %v22_v16, %v21_v12  ;;  %v29_v21 = vrot.slane %v28_v17, 2  ;;  %v37_v22 = vadd.f32 %v36_v18, %v35_v14  ;;  %v43_v23 = vrot.slane %v42_v19, 2 }
   0xd   :  { %v24_v24 = vrot.slane %v23_v20, 1  ;;  %v30_v25 = vadd.f32 %v29_v21, %v28_v17  ;;  %v38_v26 = vrot.slane %v37_v22, 1  ;;  %v44_v27 = vadd.f32 %v43_v23, %v42_v19 }
   0xf   :  { %v25_v28 = vadd.f32 %v24_v24, %v23_v20  ;;  %v31_v29 = vrot.slane %v30_v25, 1  ;;  %v39_v30 = vadd.f32 %v38_v26, %v37_v22  ;;  %v45_v31 = vrot.slane %v44_v27, 1 }
  0x11   :  { %v32_v32 = vadd.f32 %v31_v29, %v30_v25  ;;  %v48_v33 = vmul.f32 0.25, %v25_v28  ;;  %v46_v34 = vadd.f32 %v45_v31, %v44_v27  ;;  %v50_v35 = vmul.f32 0.25, %v39_v30 }
  0x13   :  { %v49_v36 = vmul.f32 0.25, %v32_v32  ;;  %v52_v37 = vadd.f32 1e-08, %v48_v33  ;;  %v51_v38 = vmul.f32 0.25, %v46_v34  ;;  %v54_v39 = vadd.f32 1e-08, %v50_v35 }
  0x15   :  { %v53_v40 = vadd.f32 1e-08, %v49_v36  ;;  %76 = vrsqrt.f32 %v52_v37  ;;  %v55_v41 = vadd.f32 1e-08, %v51_v38 }
  0x16   :  { %78 = vrsqrt.f32 %v54_v39 }
  0x17   :  { %80 = vrsqrt.f32 %v53_v40 }
  0x18   :  { %82 = vrsqrt.f32 %v55_v41 }
  0x22   :  { %v77_v42 = vpop.eup %76 }
  0x23   :  { %v79_v43 = vpop.eup %78 }
  0x24   :  { %v81_v44 = vpop.eup %80 }
  0x25   :  { %v83_v45 = vpop.eup %82  ;;  %v64_v46 = vcombine.low %v77_v42, %v81_v44 }
  0x26   :  { %v65_v47 = vcombine.low %v79_v43, %v83_v45 }
  0x27   :  { %v68_v48 = vmul.f32 %v64_v46, %v8_v0 }
  0x28   :  { %v69_v49 = vmul.f32 %v65_v47, %v9_v1 }
  0x29   :  { %70 = vst [vmem:[%s107_s1] sm:$0xff] %v68_v48 }
  0x2a   :  { %71 = vst [vmem:[%s107_s1 + $0x8] sm:$0xff] %v69_v49 }

</bundles_post_ra>
